<compile_context>
chip_gen: v5e
topology: v5e:2x2
jax: 0.10.0
libtpu: 0.0.40
codegen_flags: <defaults>
</compile_context>

<pallas_src>
import functools

import jax
import jax.numpy as jnp
from jax.experimental import pallas as pl
from jax.experimental.pallas import tpu as pltpu


def _rmsnorm_kernel(x_ref, w_ref, o_ref, *, eps, inv_hidden):
    # x_ref: (tile_rows, hidden_p), w_ref: (1, hidden_p), o_ref: (tile_rows, hidden_p)
    x = x_ref[...].astype(jnp.float32)
    # sum-of-squares * precomputed 1/true_hidden (zero-padded lanes add nothing)
    ms = jnp.sum(x * x, axis=-1, keepdims=True) * inv_hidden
    inv = jax.lax.rsqrt(ms + eps)
    w = w_ref[...].astype(jnp.float32)          # (1, hidden_p) broadcasts over rows
    o_ref[...] = (x * inv * w).astype(o_ref.dtype)


def _round_up(x, m):
    return ((x + m - 1) // m) * m


# Minimum input bytes per block before we allow splitting the grid just to
# feed multiple TensorCores / amortize the ~0.35 us per-step overhead.
_MIN_SPLIT_BLOCK_BYTES = 1 * 1024 * 1024


def _vmem_capacity_bytes():
    """Best-effort query of per-core VMEM capacity; conservative fallback."""
    try:
        info = pltpu.get_tpu_info()
        cap = getattr(info, "vmem_capacity_bytes", None)
        if cap:
            return int(cap)
    except Exception:
        pass
    return 64 * 1024 * 1024  # assume the smallest (v7x per-TC) if unknown


def _vmem_budgets():
    cap = _vmem_capacity_bytes()
    if cap >= 100 * 1024 * 1024:
        # v5e / v6e: 128 MiB VMEM.  Note v5e's scoped default is only 16 MiB,
        # so the explicit vmem_limit_bytes raise below is mandatory there.
        return 64 * 1024 * 1024, 100 * 1024 * 1024
    # v7x: 64 MiB per TensorCore -> stay conservative.
    return 32 * 1024 * 1024, 48 * 1024 * 1024


def _pick_tile_rows(rows, hidden, itemsize, workset_budget):
    # Sub-32-bit dtypes pack along sublanes: bf16 packs 2 rows/sublane,
    # int8/fp8 pack 4 -> keep the row tile a multiple of the packed group so
    # stores stay unmasked and packed-dense.
    pack = 4 if itemsize == 1 else (2 if itemsize == 2 else 1)
    row_align = 8 * pack

    # Working set per row: 2x input double-buffer + 2x output double-buffer
    # (input dtype) + ~3 fp32 temporaries per element (conservative estimate;
    # Mosaic usually fuses the elementwise chain into fewer live f32 tiles).
    per_row_bytes = hidden * (4 * itemsize + 12)
    tile_rows = workset_budget // max(per_row_bytes, 1)
    tile_rows = (tile_rows // row_align) * row_align
    tile_rows = max(row_align, tile_rows)

    # Guarantee multiple grid blocks (up to 4) when each block can still hold
    # >= _MIN_SPLIT_BLOCK_BYTES of input: keeps both v7x TensorCores streaming
    # from HBM while not fragmenting tiny tensors into overhead-dominated steps.
    bytes_per_row = max(hidden * itemsize, 1)
    min_split_rows = _round_up(
        max(1, _MIN_SPLIT_BLOCK_BYTES // bytes_per_row), row_align
    )
    desired_blocks = min(4, max(1, rows // min_split_rows))
    if desired_blocks > 1:
        split_rows = _round_up(-(-rows // desired_blocks), row_align)
        tile_rows = min(tile_rows, max(split_rows, min_split_rows))

    # Never make the tile larger than the (rounded) actual row count.
    tile_rows = min(tile_rows, _round_up(rows, row_align))
    return tile_rows


def custom_rms_norm(hidden_states, weight, eps=1e-6, *, tile_rows=None):
    orig_shape = hidden_states.shape
    orig_dtype = hidden_states.dtype
    hidden = orig_shape[-1]

    x2d = hidden_states.reshape(-1, hidden)
    rows = x2d.shape[0]
    w2d = weight.reshape(1, hidden)

    # Lane-padding path: keep the full hidden dim in ONE block and keep stores
    # lane-dense.  Zero-padded lanes contribute nothing to sum(x^2), and the
    # mean uses the true 1/hidden, so the result is exact; padded output lanes
    # are sliced off below.
    hidden_p = _round_up(hidden, 128)
    if hidden_p != hidden:
        pad = hidden_p - hidden
        x2d = jnp.pad(x2d, ((0, 0), (0, pad)))
        w2d = jnp.pad(w2d, ((0, 0), (0, pad)))

    workset_budget, vmem_limit = _vmem_budgets()
    if tile_rows is None:
        tile_rows = _pick_tile_rows(
            rows, hidden_p, jnp.dtype(orig_dtype).itemsize, workset_budget
        )

    # Ragged last block instead of padding rows: out-of-range rows of the final
    # partial block compute on undefined data, but every row is independent and
    # those rows are never written to valid output rows.
    grid = (pl.cdiv(rows, tile_rows),)

    kernel = functools.partial(
        _rmsnorm_kernel, eps=float(eps), inv_hidden=1.0 / float(hidden)
    )

    out = pl.pallas_call(
        kernel,
        out_shape=jax.ShapeDtypeStruct((rows, hidden_p), orig_dtype),
        grid_spec=pltpu.PrefetchScalarGridSpec(
            num_scalar_prefetch=0,
            grid=grid,
            in_specs=[
                pl.BlockSpec((tile_rows, hidden_p), lambda i: (i, 0)),
                pl.BlockSpec((1, hidden_p), lambda i: (0, 0)),
            ],
            out_specs=pl.BlockSpec((tile_rows, hidden_p), lambda i: (i, 0)),
        ),
        compiler_params=pltpu.CompilerParams(
            # "parallel" row axis: sharded across TensorCores on multi-TC chips
            # (v7x), harmless no-op on single-TC v5e/v6e.
            dimension_semantics=("parallel",),
            vmem_limit_bytes=vmem_limit,
        ),
    )(x2d, w2d)

    if hidden_p != hidden:
        out = out[:, :hidden]
    return out.reshape(orig_shape)


def _ref_rmsnorm(x, weight, eps):
    xf = x.astype(jnp.float32)
    var = jnp.mean(xf * xf, axis=-1, keepdims=True)
    return (xf * jax.lax.rsqrt(var + eps) * weight.astype(jnp.float32)).astype(x.dtype)


if __name__ == "__main__":
    key = jax.random.PRNGKey(0)
    eps = 1e-6

    # Main test: small shape consistent with the module's forward.
    batch, seq, hidden = 2, 8, 128
    k1, k2, k3 = jax.random.split(key, 3)
    x = jax.random.normal(k1, (batch, seq, hidden), dtype=jnp.bfloat16)
    weight = jnp.ones((hidden,), dtype=jnp.float32)   # module init: ones(hidden_size)

    y = custom_rms_norm(x, weight, eps)
    jax.block_until_ready(y)
    ref = _ref_rmsnorm(x, weight, eps)
    assert y.shape == x.shape and y.dtype == x.dtype
    assert jnp.allclose(y.astype(jnp.float32), ref.astype(jnp.float32),
                        atol=1e-2, rtol=1e-2)

    # Ragged test: rows (5*8=40) not a multiple of the forced tile (16),
    # exercising the partial last row-block.
    x2 = jax.random.normal(k2, (5, 8, hidden), dtype=jnp.bfloat16)
    y2 = custom_rms_norm(x2, weight, eps, tile_rows=16)
    jax.block_until_ready(y2)
    ref2 = _ref_rmsnorm(x2, weight, eps)
    assert y2.shape == x2.shape and y2.dtype == x2.dtype
    assert jnp.allclose(y2.astype(jnp.float32), ref2.astype(jnp.float32),
                        atol=1e-2, rtol=1e-2)

    # Lane-padding test: hidden (96) not a multiple of 128 -> padded to 128
    # internally, result sliced back; values must match the reference exactly
    # (zero padding does not perturb sum(x^2) and we divide by the true hidden).
    hidden3 = 96
    x3 = jax.random.normal(k3, (2, 8, hidden3), dtype=jnp.bfloat16)
    w3 = jnp.ones((hidden3,), dtype=jnp.float32)
    y3 = custom_rms_norm(x3, w3, eps)
    jax.block_until_ready(y3)
    ref3 = _ref_rmsnorm(x3, w3, eps)
    assert y3.shape == x3.shape and y3.dtype == x3.dtype
    assert jnp.allclose(y3.astype(jnp.float32), ref3.astype(jnp.float32),
                        atol=1e-2, rtol=1e-2)

    print("KERNEL_OK")
</pallas_src>

<mosaic_0001>
module attributes {stable_mosaic.version = 11 : i64} {
  func.func @_rmsnorm_kernel(%arg0: i32, %arg1: memref<16x128xbf16, #tpu.memory_space<vmem>>, %arg2: memref<1x128xf32, #tpu.memory_space<vmem>>, %arg3: memref<16x128xbf16, #tpu.memory_space<vmem>>) attributes {dimension_semantics = [#tpu.dimension_semantics<parallel>], iteration_bounds = array<i64: 1>, scalar_prefetch = 0 : i64, scratch_operands = 0 : i64, tpu.core_type = #tpu.core_type<tc>, window_params = [{transform_indices = @transform_0, window_bounds = array<i64: 16, 128>}, {pipeline_mode = #tpu.pipeline_mode<synchronous>, transform_indices = @transform_1, window_bounds = array<i64: 1, 128>}, {transform_indices = @transform_2, window_bounds = array<i64: 16, 128>}]} {
    %c0 = arith.constant 0 : index
    %c0_0 = arith.constant 0 : index
    %0 = vector.load %arg1[%c0, %c0_0] : memref<16x128xbf16, #tpu.memory_space<vmem>>, vector<16x128xbf16>
    %1 = arith.extf %0 : vector<16x128xbf16> to vector<16x128xf32>
    %2 = arith.mulf %1, %1 : vector<16x128xf32>
    %cst = arith.constant dense<0.000000e+00> : vector<16xf32>
    %3 = vector.multi_reduction <add>, %2, %cst [1] : vector<16x128xf32> to vector<16xf32>
    %4 = vector.shape_cast %3 : vector<16xf32> to vector<16x1xf32>
    %cst_1 = arith.constant 7.812500e-03 : f32
    %5 = vector.broadcast %cst_1 : f32 to vector<16x1xf32>
    %6 = arith.mulf %4, %5 : vector<16x1xf32>
    %cst_2 = arith.constant 9.99999997E-7 : f32
    %7 = vector.broadcast %cst_2 : f32 to vector<16x1xf32>
    %8 = arith.addf %6, %7 : vector<16x1xf32>
    %9 = math.rsqrt %8 : vector<16x1xf32>
    %c0_3 = arith.constant 0 : index
    %c0_4 = arith.constant 0 : index
    %10 = vector.load %arg2[%c0_3, %c0_4] : memref<1x128xf32, #tpu.memory_space<vmem>>, vector<1x128xf32>
    %11 = vector.broadcast %9 : vector<16x1xf32> to vector<16x128xf32>
    %12 = arith.mulf %1, %11 : vector<16x128xf32>
    %13 = vector.broadcast %10 : vector<1x128xf32> to vector<16x128xf32>
    %14 = arith.mulf %12, %13 : vector<16x128xf32>
    %15 = arith.truncf %14 : vector<16x128xf32> to vector<16x128xbf16>
    %c0_5 = arith.constant 0 : index
    %c0_6 = arith.constant 0 : index
    %16 = vector.load %arg3[%c0_5, %c0_6] : memref<16x128xbf16, #tpu.memory_space<vmem>>, vector<16x128xbf16>
    tpu.vector_store %arg3[%c0_5, %c0_6], %15 {strides = array<i32>} : memref<16x128xbf16, #tpu.memory_space<vmem>>, vector<16x128xbf16>,
    return
  }
  func.func @transform_0(%arg0: i32) -> (i32, i32) {
    %c0_i32 = arith.constant 0 : i32
    %c0_i32_0 = arith.constant 0 : i32
    return %arg0, %c0_i32 : i32, i32
  }
  func.func @transform_1(%arg0: i32) -> (i32, i32) {
    %c0_i32 = arith.constant 0 : i32
    %c0_i32_0 = arith.constant 0 : i32
    %c0_i32_1 = arith.constant 0 : i32
    return %c0_i32, %c0_i32_0 : i32, i32
  }
  func.func @transform_2(%arg0: i32) -> (i32, i32) {
    %c0_i32 = arith.constant 0 : i32
    %c0_i32_0 = arith.constant 0 : i32
    return %arg0, %c0_i32 : i32, i32
  }
}

</mosaic_0001>

<bundles_post_ra>
// kernel: tpu_custom_call.1
= control target key start
LH: loop header
LB: loop body
LE: loop exit
PB: predicated region body
PF: predicated region fallthrough
CT: control target
= control target key end

     0   :  { %7 = vsyncpa [#allocation3], 0  ;;  %s240_s0 = inlined_call_operand.hbm [shape: bf16[16,128], index: 0, kind: input, shape index: {}]   ;;  %s241_s1 = inlined_call_operand.hbm [shape: f32[1,128], index: 1, kind: input, shape index: {}]   ;;  %s242_s2 = inlined_call_operand.hbm [shape: bf16[16,128], index: 2, kind: output, shape index: {}]  }
   0x1   :  { %8 = vsyncpa [#allocation6], 0 }
   0x2   :  { %9 = vsyncpa [#allocation4], 0  ;;  %s14_s11 = sshll.u32 %s240_s0, 4  ;;  %s205_s12 = smov [#allocation2]   ;;  %s15_s11 = int_to_ptr.hbm [resolvable:$true] %s14_s11 }
   0x3   :  { %s16_s13 = sshll.u32 %s205_s12, 4  ;;  %s28_s16 = sshll.u32 %s241_s1, 4  ;;  %s17_s13 = int_to_ptr.vmem [resolvable:$true] %s16_s13  ;;  %s29_s16 = int_to_ptr.hbm [resolvable:$true] %s28_s16 }
   0x4   :  { %s206_s17 = smov 64   ;;  %s207_s18 = smov 4  }
   0x5   :  { %22 = dma.hbm_to_vmem [thread:$0]  %s15_s11, 128, %s17_s13, [#allocation3], %s206_s17, %s206_s17, %s207_s18  }
   0x6   :  { %s208_s19 = smov [#allocation5]  }
   0x7   :  { %s30_s20 = sshll.u32 %s208_s19, 4  ;;  %s31_s20 = int_to_ptr.vmem [resolvable:$true] %s30_s20 }
   0x8   :  { %33 = dma.hbm_to_vmem [thread:$0]  %s29_s16, 16, %s31_s20, [#allocation6]  }
   0x9   :  { %199 = dma.done.wait [#allocation3], 128  }
   0xa   :  { %200 = vsyncadd [#allocation3], 4294967168 }
   0xb   :  { %201 = dma.done.wait [#allocation6], 16  }
   0xc   :  { %202 = vsyncadd [#allocation6], 4294967280  ;;  %v109_v0 = vld [vmem:[#allocation2] sm:$0xff]   ;;  %v122_v25 = vld [vmem:[#allocation5] ss:$0 sm:$0xff]  ;;  %s209_s0 = smov [#allocation7]  }
   0xd   :  { %v110_v1 = vunpack.c.l.bf16 %v109_v0  ;;  %v111_v3 = vunpack.c.h.bf16 %v109_v0  ;;  %s92_s1 = sshll.u32 %s209_s0, 4  ;;  %s94_s23 = sshll.u32 %s242_s2, 4  ;;  %s93_s1 = int_to_ptr.vmem [resolvable:$true] %s92_s1  ;;  %s95_s23 = int_to_ptr.hbm [resolvable:$true] %s94_s23 }
   0xf   :  { %v46_v2 = vmul.f32 %v110_v1, %v110_v1  ;;  %v47_v4 = vmul.f32 %v111_v3, %v111_v3 }
  0x11   :  { %48 = vadd.xlane.f32.xlu0 %v46_v2 }
  0x19   :  { %50 = vadd.xlane.f32.xlu0 %v47_v4 }
  0x84   :  { %v49_v5 = vpop.xlane.xlu0 %48 }
  0x85   :  { %v52_v6 = vmul.f32 0.0078125, %v49_v5 }
  0x87   :  { %v54_v7 = vadd.f32 1e-06, %v52_v6 }
  0x89   :  { %123 = vrsqrt.f32 %v54_v7  ;;  %vm62_vm1 = vweird.f32 %v54_v7 }
  0x8c   :  { %v51_v8 = vpop.xlane.xlu0 %50 }
  0x8d   :  { %v53_v9 = vmul.f32 0.0078125, %v51_v8 }
  0x8f   :  { %v124_v10 = vpop.eup %123  ;;  %v55_v11 = vadd.f32 1e-06, %v53_v9 }
  0x90   :  { %v57_v12 = vmul.f32 %v124_v10, %v54_v7  ;;  %vm63_vm0 = vweird.f32 %v124_v10 }
  0x91   :  { %125 = vrsqrt.f32 %v55_v11  ;;  %vm64_vm2 = vmor %vm62_vm1, %vm63_vm0  ;;  %vm72_vm4 = vweird.f32 %v55_v11 }
  0x92   :  { %v58_v13 = vmul.f32 %v124_v10, %v57_v12 }
  0x94   :  { %v59_v14 = vmul.f32 0.5, %v58_v13 }
  0x96   :  { %v60_v15 = vsub.f32 1.5, %v59_v14 }
  0x97   :  { %v126_v16 = vpop.eup %125 }
  0x98   :  { %v67_v17 = vmul.f32 %v126_v16, %v55_v11  ;;  %v61_v18 = vmul.f32 %v124_v10, %v60_v15  ;;  %vm73_vm3 = vweird.f32 %v126_v16 }
  0x99   :  { %vm74_vm5 = vmor %vm72_vm4, %vm73_vm3 }
  0x9a   :  { %v68_v19 = vmul.f32 %v126_v16, %v67_v17  ;;  %v65_v21 = vsel %vm64_vm2, %v124_v10, %v61_v18 }
  0x9b   :  { %v77_v24 = vmul.f32 %v110_v1, %v65_v21 }
  0x9c   :  { %v69_v20 = vmul.f32 0.5, %v68_v19 }
  0x9d   :  { %v82_v28 = vmul.f32 %v122_v25, %v77_v24 }
  0x9e   :  { %v70_v22 = vsub.f32 1.5, %v69_v20 }
  0xa0   :  { %v71_v23 = vmul.f32 %v126_v16, %v70_v22 }
  0xa2   :  { %v75_v26 = vsel %vm74_vm5, %v126_v16, %v71_v23 }
  0xa3   :  { %v78_v27 = vmul.f32 %v111_v3, %v75_v26 }
  0xa5   :  { %v83_v29 = vmul.f32 %v122_v25, %v78_v27 }
  0xa7   :  { %v115_v30 = vpack.c.bf16 %v83_v29, %v82_v28 }
  0xa9   :  { %116 = vst [vmem:[#allocation7] sm:$0xff] %v115_v30  }
  0xaa   :  { %100 = dma.vmem_to_hbm [thread:$0]  %s93_s1, 128, %s95_s23, [#allocation4], %s206_s17, %s206_s17, %s207_s18  }
  0xab   :  { %203 = dma.done.wait [#allocation4], 128  }
  0xac   :  { %204 = vsyncadd [#allocation4], 4294967168 }
  0xad   :  { %105 = vsyncpa [#allocation3], 1 }
  0xae   :  { %106 = vsyncpa [#allocation6], 1 }
  0xaf   :  { %107 = vsyncpa [#allocation4], 1 }

</bundles_post_ra>
